<compile_context>
chip_gen: v6e
topology: v6e:2x2x1
jax: 0.10.0
libtpu: 0.0.40
codegen_flags: <defaults>
</compile_context>

<pallas_src>
import functools
import math

import jax
import jax.numpy as jnp
from jax.experimental import pallas as pl
from jax.experimental.pallas import tpu as pltpu

_SHIFT = math.log(2.0)
_LANE = 128
_LANE_CANDIDATES = (2048, 1024, 512, 256, 128)

# ~4 MiB per buffer -> ~16 MiB VMEM with double-buffered input+output.
_TARGET_TILE_BYTES = 4 << 20
_VMEM_LIMIT_BYTES = 32 << 20
# Below this total size a single block is cheapest (per-step overhead wins).
_SINGLE_BLOCK_BYTES = 512 << 10


def _round_up(x: int, m: int) -> int:
    return ((x + m - 1) // m) * m


@functools.lru_cache(maxsize=None)
def _bf16_transcendentals_ok() -> bool:
    """bf16 VPU/EUP path exists on v6e/v7x; v2-v5 are f32-only."""
    try:
        kind = jax.devices()[0].device_kind.lower()
    except Exception:
        return False
    return not any(tag in kind for tag in ("v2", "v3", "v4", "v5"))


def _shifted_softplus_kernel(x_ref, o_ref, *, compute_dtype):
    x = x_ref[...].astype(compute_dtype)
    # Numerically stable softplus: log1p(exp(-|x|)) + max(x, 0).
    sp = jnp.log1p(jnp.exp(-jnp.abs(x))) + jnp.maximum(x, 0.0)
    o_ref[...] = (sp.astype(jnp.float32) - _SHIFT).astype(o_ref.dtype)


def _run_2d(x2d: jax.Array) -> jax.Array:
    rows, lanes = x2d.shape
    itemsize = jnp.dtype(x2d.dtype).itemsize
    row_bytes = lanes * itemsize
    total_bytes = rows * row_bytes

    if total_bytes <= _SINGLE_BLOCK_BYTES or rows <= 8:
        # Tiny input: one full-extent block (splitting only adds overhead).
        tile_rows = rows
    else:
        desired = max(8, (_TARGET_TILE_BYTES // row_bytes) // 8 * 8)
        # Guarantee >= 2 grid steps so v7x's two TensorCores both get work.
        half = _round_up(pl.cdiv(rows, 2), 8)
        tile_rows = max(8, min(desired, half))
        # Prefer an even step count (an odd count idles one TC at the end).
        steps = pl.cdiv(rows, tile_rows)
        if steps > 1 and steps % 2 == 1:
            tile_rows = max(8, min(tile_rows, _round_up(pl.cdiv(rows, steps + 1), 8)))

    grid = (pl.cdiv(rows, tile_rows),)
    n = rows * lanes
    cost = pl.CostEstimate(
        flops=6 * n,                 # abs, max, add, sub + casts
        transcendentals=2 * n,       # exp + log1p per element
        bytes_accessed=2 * n * itemsize,
    )

    compute_dtype = (
        jnp.bfloat16
        if (x2d.dtype == jnp.bfloat16 and _bf16_transcendentals_ok())
        else jnp.float32
    )
    kernel = functools.partial(_shifted_softplus_kernel, compute_dtype=compute_dtype)

    return pl.pallas_call(
        kernel,
        out_shape=jax.ShapeDtypeStruct((rows, lanes), x2d.dtype),
        grid=grid,
        in_specs=[pl.BlockSpec((tile_rows, lanes), lambda i: (i, 0))],
        out_specs=pl.BlockSpec((tile_rows, lanes), lambda i: (i, 0)),
        compiler_params=pltpu.CompilerParams(
            dimension_semantics=("parallel",),
            vmem_limit_bytes=_VMEM_LIMIT_BYTES,
        ),
        cost_estimate=cost,
    )(x2d)


def shifted_softplus(x: jax.Array) -> jax.Array:
    """softplus(x) - log(2), elementwise, via a Pallas TPU kernel."""
    orig_shape = x.shape
    n = x.size
    if n == 0:
        return x
    x_flat = x.reshape(-1)

    # Common case: element count divides a lane-dense width -> zero-copy
    # reshape into a (rows, lanes) slab, no padding, no extra HBM traffic.
    for cand in _LANE_CANDIDATES:
        if n % cand == 0:
            out2d = _run_2d(x_flat.reshape(n // cand, cand))
            return out2d.reshape(orig_shape)

    # Ragged: run the kernel on the 128-aligned prefix and compute the
    # (<128-element) tail in plain JAX -- avoids full-array pad/slice copies.
    n_main = (n // _LANE) * _LANE
    tail = jax.nn.softplus(x_flat[n_main:].astype(jnp.float32)) - _SHIFT
    tail = tail.astype(x.dtype)
    if n_main == 0:
        return tail.reshape(orig_shape)
    lw = next(c for c in _LANE_CANDIDATES if n_main % c == 0)
    head = _run_2d(x_flat[:n_main].reshape(n_main // lw, lw)).reshape(-1)
    return jnp.concatenate([head, tail]).reshape(orig_shape)


if __name__ == "__main__":
    def ref_fn(a):
        return jax.nn.softplus(a.astype(jnp.float32)) - _SHIFT

    key = jax.random.PRNGKey(0)
    k0, k1, k2, k3 = jax.random.split(key, 4)

    # Small NCHW-style activation: single-block path.
    x = jax.random.normal(k0, (2, 4, 16, 16), dtype=jnp.float32) * 3.0
    y = jax.block_until_ready(shifted_softplus(x))
    assert y.shape == x.shape and y.dtype == x.dtype
    assert jnp.allclose(y, ref_fn(x), atol=1e-5, rtol=1e-5)

    # Medium input: multi-step pipelined path (>= 2 grid steps, even count).
    x2 = jax.random.normal(k1, (16, 8, 64, 64), dtype=jnp.float32) * 3.0
    y2 = jax.block_until_ready(shifted_softplus(x2))
    assert jnp.allclose(y2, ref_fn(x2), atol=1e-5, rtol=1e-5)

    # Ragged input: 128-aligned prefix through the kernel + tiny JAX tail.
    x3 = jax.random.normal(k2, (3, 5, 67), dtype=jnp.float32) * 3.0
    y3 = jax.block_until_ready(shifted_softplus(x3))
    assert y3.shape == x3.shape
    assert jnp.allclose(y3, ref_fn(x3), atol=1e-5, rtol=1e-5)

    # bf16 I/O (bf16 transcendentals on v6e/v7x, f32 upcast elsewhere).
    x4 = (jax.random.normal(k3, (4, 8, 32, 32), dtype=jnp.float32) * 3.0).astype(jnp.bfloat16)
    y4 = jax.block_until_ready(shifted_softplus(x4))
    assert y4.dtype == jnp.bfloat16
    assert jnp.allclose(y4.astype(jnp.float32), ref_fn(x4), atol=1e-1, rtol=5e-2)

    print("KERNEL_OK")
</pallas_src>

<mosaic_0001>
module attributes {stable_mosaic.version = 11 : i64} {
  func.func @_shifted_softplus_kernel(%arg0: i32, %arg1: memref<1x2048xf32, #tpu.memory_space<vmem>>, %arg2: memref<1x2048xf32, #tpu.memory_space<vmem>>) attributes {dimension_semantics = [#tpu.dimension_semantics<parallel>], iteration_bounds = array<i64: 1>, scalar_prefetch = 0 : i64, scratch_operands = 0 : i64, tpu.core_type = #tpu.core_type<tc>, window_params = [{transform_indices = @transform_0, window_bounds = array<i64: 1, 2048>}, {transform_indices = @transform_1, window_bounds = array<i64: 1, 2048>}]} {
    %c0 = arith.constant 0 : index
    %c0_0 = arith.constant 0 : index
    %0 = vector.load %arg1[%c0, %c0_0] : memref<1x2048xf32, #tpu.memory_space<vmem>>, vector<1x2048xf32>
    %1 = math.absf %0 : vector<1x2048xf32>
    %cst = arith.constant 0.000000e+00 : f32
    %2 = vector.broadcast %cst : f32 to vector<1x2048xf32>
    %3 = arith.subf %2, %1 : vector<1x2048xf32>
    %4 = math.exp %3 : vector<1x2048xf32>
    %5 = math.log1p %4 : vector<1x2048xf32>
    %cst_1 = arith.constant 0.000000e+00 : f32
    %6 = vector.broadcast %cst_1 : f32 to vector<1x2048xf32>
    %7 = arith.maximumf %0, %6 : vector<1x2048xf32>
    %8 = arith.addf %5, %7 : vector<1x2048xf32>
    %cst_2 = arith.constant 0.693147182 : f32
    %9 = vector.broadcast %cst_2 : f32 to vector<1x2048xf32>
    %10 = arith.subf %8, %9 : vector<1x2048xf32>
    %c0_3 = arith.constant 0 : index
    %c0_4 = arith.constant 0 : index
    %11 = vector.load %arg2[%c0_3, %c0_4] : memref<1x2048xf32, #tpu.memory_space<vmem>>, vector<1x2048xf32>
    tpu.vector_store %arg2[%c0_3, %c0_4], %10 {strides = array<i32>} : memref<1x2048xf32, #tpu.memory_space<vmem>>, vector<1x2048xf32>,
    return
  }
  func.func @transform_0(%arg0: i32) -> (i32, i32) {
    %c0_i32 = arith.constant 0 : i32
    %c0_i32_0 = arith.constant 0 : i32
    return %arg0, %c0_i32 : i32, i32
  }
  func.func @transform_1(%arg0: i32) -> (i32, i32) {
    %c0_i32 = arith.constant 0 : i32
    %c0_i32_0 = arith.constant 0 : i32
    return %arg0, %c0_i32 : i32, i32
  }
}

</mosaic_0001>

<bundles_post_ra>
// kernel: tpu_custom_call.1
= control target key start
LH: loop header
LB: loop body
LE: loop exit
PB: predicated region body
PF: predicated region fallthrough
CT: control target
= control target key end

     0   :  { %6 = vsyncpa [#allocation3], 0  ;;  %s146_s0 = inlined_call_operand.hbm [shape: f32[1,2048], index: 0, kind: input, shape index: {}]   ;;  %s147_s1 = inlined_call_operand.hbm [shape: f32[1,2048], index: 1, kind: output, shape index: {}]  }
   0x1   :  { %7 = vsyncpa [#allocation4], 0  ;;  %s128_s6 = smov [#allocation2]  }
   0x2   :  { %s14_s7 = sshll.u32 %s128_s6, 4  ;;  %s15_s7 = int_to_ptr.vmem [resolvable:$true] %s14_s7 }
   0x3   :  { %s92_s8 = scalar_lea.vmem %s15_s7, 256  ;;  %p97_p1 = scmp.lt.s32.totalorder %s15_s7, %s15_s7 }
   0x4   :  { %p93_p0 = scmp.ne.s32.totalorder %s15_s7, %s92_s8  ;;  %p98_p2 = scmp.lt.s32.totalorder %s92_s8, %s92_s8 }
   0x6   :  { %p99_p3 = por %p98_p2, %p97_p1 }
   0x8   :  { %p100_p4 = pnand %p99_p3, %p93_p0 }
   0xa   :  { %103 = shalt.err (!%p100_p4)
}
   0xb   :  { %17 = dma.hbm_to_vmem [thread:$0]  %s146_s0, 256, %s15_s7, [#allocation3]  }
   0xc   :  { %124 = dma.done.wait [#allocation3], 256  }
   0xd   :  { %125 = vsyncadd [#allocation3], 4294967040  ;;  %v21_v0 = vld [vmem:[#allocation2] sm:$0xff]  ;;  %v22_v1 = vld [vmem:[#allocation2 + $0x8] sm:$0xff]  ;;  %s129_s0 = smov [#allocation5]  }
   0xe   :  { %v23_v2 = vand.u32 2147483647, %v21_v0  ;;  %v24_v3 = vand.u32 2147483647, %v22_v1  ;;  %v49_v20 = vmax.f32 %v21_v0, 0.0  ;;  %v50_v24 = vmax.f32 %v22_v1, 0.0 }
   0xf   :  { %s63_s11 = sshll.u32 %s129_s0, 4  ;;  %s64_s11 = int_to_ptr.vmem [resolvable:$true] %s63_s11 }
  0x10   :  { %v25_v4 = vsub.f32 0.0, %v23_v2  ;;  %v26_v5 = vsub.f32 0.0, %v24_v3  ;;  %s104_s12 = scalar_lea.vmem %s64_s11, 256  ;;  %p109_p6 = scmp.lt.s32.totalorder %s64_s11, %s64_s11 }
  0x11   :  { %p105_p5 = scmp.ne.s32.totalorder %s64_s11, %s104_s12  ;;  %p110_p7 = scmp.lt.s32.totalorder %s104_s12, %s104_s12 }
  0x12   :  { %v27_v6 = vmul.f32 1.442695, %v25_v4  ;;  %v29_v7 = vmul.f32 1.442695, %v26_v5 }
  0x13   :  { %p111_p8 = por %p110_p7, %p109_p6 }
  0x14   :  { %76 = vpow2.f32 %v27_v6 }
  0x15   :  { %78 = vpow2.f32 %v29_v7  ;;  %p112_p9 = pnand %p111_p8, %p105_p5 }
  0x21   :  { %v77_v8 = vpop.eup %76 }
  0x22   :  { %v79_v9 = vpop.eup %78  ;;  %v31_v10 = vadd.f32 1.0, %v77_v8  ;;  %v34_v12 = vmul.f32 -0.5, %v77_v8  ;;  %v37_v15 = vand.u32 2147483647, %v77_v8 }
  0x23   :  { %v40_v11 = vadd.f32 1.0, %v79_v9  ;;  %v43_v13 = vmul.f32 -0.5, %v79_v9  ;;  %v46_v17 = vand.u32 2147483647, %v79_v9 }
  0x24   :  { %80 = vlog2.f32 %v31_v10  ;;  %v35_v14 = vadd.f32 1.0, %v34_v12  ;;  %vm38_vm0 = vcmp.lt.f32.partialorder %v37_v15, 0.0004427343 }
  0x25   :  { %82 = vlog2.f32 %v40_v11  ;;  %v44_v16 = vadd.f32 1.0, %v43_v13  ;;  %vm47_vm1 = vcmp.lt.f32.partialorder %v46_v17, 0.0004427343 }
  0x26   :  { %v36_v18 = vmul.f32 %v77_v8, %v35_v14 }
  0x27   :  { %v45_v21 = vmul.f32 %v79_v9, %v44_v16 }
  0x31   :  { %v81_v19 = vpop.eup %80 }
  0x32   :  { %v83_v22 = vpop.eup %82  ;;  %v33_v23 = vmul.f32 0.6931472, %v81_v19 }
  0x33   :  { %v42_v25 = vmul.f32 0.6931472, %v83_v22 }
  0x34   :  { %v39_v26 = vsel %vm38_vm0, %v36_v18, %v33_v23 }
  0x35   :  { %v51_v27 = vadd.f32 %v49_v20, %v39_v26  ;;  %v48_v28 = vsel %vm47_vm1, %v45_v21, %v42_v25 }
  0x36   :  { %v52_v29 = vadd.f32 %v50_v24, %v48_v28 }
  0x37   :  { %v72_v30 = vadd.f32 -0.6931472, %v51_v27 }
  0x38   :  { %v73_v31 = vadd.f32 -0.6931472, %v52_v29 }
  0x39   :  { %55 = vst [vmem:[#allocation5] sm:$0xff] %v72_v30 }
  0x3a   :  { %56 = vst [vmem:[#allocation5 + $0x8] sm:$0xff] %v73_v31 }
  0x3b   :  { %115 = shalt.err (!%p112_p9)
}
  0x3c   :  { %66 = dma.vmem_to_hbm [thread:$0]  %s64_s11, 256, %s147_s1, [#allocation4]  }
  0x3d   :  { %126 = dma.done.wait [#allocation4], 256  }
  0x3e   :  { %127 = vsyncadd [#allocation4], 4294967040 }
  0x3f   :  { %70 = vsyncpa [#allocation3], 1 }
  0x40   :  { %71 = vsyncpa [#allocation4], 1 }

</bundles_post_ra>
